<compile_context>
chip_gen: v5e
topology: v5e:2x2
jax: 0.10.0
libtpu: 0.0.40
codegen_flags: <defaults>
</compile_context>

<pallas_src>
import functools
import math

import jax
import jax.numpy as jnp
from jax.experimental import pallas as pl
from jax.experimental.pallas import tpu as pltpu


def _build_pe_table(d_model: int, max_len: int = 5000) -> jnp.ndarray:
    """Exactly mirrors the PyTorch __init__ buffer construction.

    Returns pe with shape (max_len, 1, d_model), float32.
    """
    position = jnp.arange(0, max_len, dtype=jnp.float32)[:, None]            # (max_len, 1)
    div_term = jnp.exp(
        jnp.arange(0, d_model, 2, dtype=jnp.float32) * (-math.log(10000.0) / d_model)
    )                                                                         # (d_model/2,)
    angles = position * div_term                                              # (max_len, d_model/2)
    pe = jnp.zeros((max_len, d_model), dtype=jnp.float32)
    pe = pe.at[:, 0::2].set(jnp.sin(angles))
    pe = pe.at[:, 1::2].set(jnp.cos(angles))
    # pe.unsqueeze(0).transpose(0, 1) -> (max_len, 1, d_model)
    return pe[:, None, :]


def _pe_add_kernel(x_ref, pe_ref, o_ref, *, batch: int):
    # x_ref / o_ref: (TS, B*D) lane-dense slab tile in VMEM
    # pe_ref:        (TS, D)   tile in VMEM (batch axis squeezed in the wrapper)
    #
    # Single wide add: lane-broadcast the pe tile across the B chunks on-chip
    # (XLU/copy work, hidden under the DMA shadow) so the store is one wide,
    # unmasked vst when B*D % 128 == 0 -- instead of B masked per-chunk stores.
    pe_tile = pe_ref[...]
    pe_wide = jnp.tile(pe_tile, (1, batch)) if batch > 1 else pe_tile
    o_ref[...] = x_ref[...] + pe_wide


def _vmem_capacity_bytes(default: int = 64 << 20) -> int:
    """Physical VMEM per TensorCore; conservative 64 MiB (v7x) fallback."""
    try:
        cap = int(pltpu.get_tpu_info().vmem_capacity_bytes)
        if cap > 0:
            return cap
    except Exception:
        pass
    return default


def _choose_tile_rows(num_rows: int, row_bytes: int, target_tile_bytes: int,
                      align: int, min_steps: int = 4) -> int:
    """Largest row count whose x-tile is ~target_tile_bytes, sublane-aligned.

    Also caps the tile so the grid has >= min_steps steps when the sequence is
    long enough (pipeline overlap + balanced 2-TC split on v7x).
    """
    rows = max(align, target_tile_bytes // max(1, row_bytes))
    if rows >= num_rows:
        rows = num_rows                      # full extent -> always legal
    else:
        rows = max(align, (rows // align) * align)
    if num_rows >= min_steps * align:
        cap = max(align, (num_rows // min_steps // align) * align)
        rows = min(rows, cap)
    return rows


def positional_encoding_forward(
    x: jnp.ndarray,
    pe: jnp.ndarray,
    *,
    training: bool = False,
    target_tile_bytes: int | None = None,
) -> jnp.ndarray:
    """x: (seq_len, batch, d_model); pe: (max_len, 1, d_model). Eval-mode forward."""
    assert not training, "only eval-mode (dropout == identity) is implemented"
    S, B, D = x.shape
    W = B * D
    itemsize = jnp.dtype(x.dtype).itemsize

    # Glue (free / one-time): squeeze pe's singleton batch axis, cast once to
    # x.dtype, and present x as a lane-dense (S, B*D) row-major slab.
    pe_2d = pe[:S, 0, :].astype(x.dtype)   # (S, D)
    x_2d = x.reshape(S, W)                 # (S, B*D), free row-major reshape

    # Generation-aware tile target: ~16 MiB x-tiles on 128-MiB-VMEM parts
    # (v5e/v6e), ~8 MiB on 64-MiB parts (v7x), so double-buffered in+out+pe
    # plus the on-chip pe-broadcast temporary stays well under physical VMEM.
    vmem_cap = _vmem_capacity_bytes()
    if target_tile_bytes is None:
        target_tile_bytes = (16 << 20) if vmem_cap >= (96 << 20) else (8 << 20)
    vmem_ceiling = (vmem_cap * 4) // 5      # leave ~20% headroom under physical

    # Sublane alignment by dtype packing: 8 rows (f32), 16 (bf16), 32 (int8/fp8).
    align = max(8, 32 // itemsize)
    TS = _choose_tile_rows(S, W * itemsize, target_tile_bytes, align)

    # VMEM budget (corrected accounting): double-buffered x-in + x-out + pe
    # streams, plus one x-sized tile for the on-chip pe lane-broadcast
    # temporary, plus small headroom.  Shrink TS if it would not fit.
    while True:
        tile_x = TS * W * itemsize
        tile_pe = TS * D * itemsize
        needed = 2 * (2 * tile_x + tile_pe) + tile_x + (2 << 20)
        if needed <= vmem_ceiling or TS <= align:
            break
        TS = max(align, (TS // 2 // align) * align)
    vmem_limit = int(min(max(needed, 16 << 20), vmem_ceiling))

    grid = (pl.cdiv(S, TS),)

    out_2d = pl.pallas_call(
        functools.partial(_pe_add_kernel, batch=B),
        out_shape=jax.ShapeDtypeStruct((S, W), x.dtype),
        grid_spec=pltpu.PrefetchScalarGridSpec(
            num_scalar_prefetch=0,
            grid=grid,
            in_specs=[
                pl.BlockSpec((TS, W), lambda i: (i, 0)),   # x slab tile
                pl.BlockSpec((TS, D), lambda i: (i, 0)),   # pe tile (no batch axis)
            ],
            out_specs=pl.BlockSpec((TS, W), lambda i: (i, 0)),
        ),
        compiler_params=pltpu.CompilerParams(
            # Tiles along S are independent: lets v7x shard the grid across its
            # two TensorCores; harmless (no-op) on 1-TC v5e/v6e.
            # TODO(synk): if a profile shows only one v7x TC busy, switch to
            # pltpu.CORE_PARALLEL / pl.core_map with an explicit size-2 axis.
            dimension_semantics=("parallel",),
            vmem_limit_bytes=vmem_limit,
        ),
    )(x_2d, pe_2d)

    # Dropout (p=0.1) in eval mode is identity.
    return out_2d.reshape(S, B, D)


if __name__ == "__main__":
    k1, k2, k3 = jax.random.split(jax.random.PRNGKey(0), 3)

    # --- primary (small) check: shapes consistent with the module's forward ---
    seq_len, batch, d_model = 8, 2, 32
    pe = _build_pe_table(d_model, max_len=64)              # (max_len, 1, d_model)
    x = jax.random.normal(k1, (seq_len, batch, d_model), dtype=jnp.float32)

    out = jax.block_until_ready(positional_encoding_forward(x, pe))
    ref = x + pe[:seq_len]                                  # plain-JAX reference (eval mode)
    assert out.shape == (seq_len, batch, d_model)
    assert jnp.allclose(out, ref, atol=1e-6), "mismatch vs reference (small)"

    # --- multi-tile check: pipelined grid, partial last block, W % 128 == 0 ---
    seq2, batch2, d2 = 648, 4, 128                          # TS=128 -> 6 steps, last block 8 rows
    pe2 = _build_pe_table(d2, max_len=1024)
    x2 = jax.random.normal(k2, (seq2, batch2, d2), dtype=jnp.float32)

    out2 = jax.block_until_ready(
        positional_encoding_forward(x2, pe2, target_tile_bytes=256 << 10)
    )
    ref2 = x2 + pe2[:seq2]
    assert out2.shape == (seq2, batch2, d2)
    assert jnp.allclose(out2, ref2, atol=1e-6), "mismatch vs reference (tiled)"

    # --- bf16 check: exercises the 16-row sublane alignment path ---
    seq3, batch3, d3 = 200, 2, 128
    pe3 = _build_pe_table(d3, max_len=256)
    x3 = jax.random.normal(k3, (seq3, batch3, d3), dtype=jnp.bfloat16)

    out3 = jax.block_until_ready(
        positional_encoding_forward(x3, pe3, target_tile_bytes=64 << 10)
    )
    # Kernel casts pe to x.dtype before the add; mirror that in the reference.
    ref3 = x3 + pe3[:seq3].astype(jnp.bfloat16)
    assert out3.dtype == jnp.bfloat16
    assert jnp.allclose(out3.astype(jnp.float32), ref3.astype(jnp.float32), atol=1e-2), \
        "mismatch vs reference (bf16)"

    print("KERNEL_OK")
</pallas_src>

<mosaic_0001>
module attributes {stable_mosaic.version = 11 : i64} {
  func.func @_pe_add_kernel(%arg0: i32, %arg1: memref<8x64xf32, #tpu.memory_space<vmem>>, %arg2: memref<8x32xf32, #tpu.memory_space<vmem>>, %arg3: memref<8x64xf32, #tpu.memory_space<vmem>>) attributes {dimension_semantics = [#tpu.dimension_semantics<parallel>], iteration_bounds = array<i64: 1>, scalar_prefetch = 0 : i64, scratch_operands = 0 : i64, tpu.core_type = #tpu.core_type<tc>, window_params = [{transform_indices = @transform_0, window_bounds = array<i64: 8, 64>}, {transform_indices = @transform_1, window_bounds = array<i64: 8, 32>}, {transform_indices = @transform_2, window_bounds = array<i64: 8, 64>}]} {
    %c0 = arith.constant 0 : index
    %c0_0 = arith.constant 0 : index
    %0 = vector.load %arg2[%c0, %c0_0] : memref<8x32xf32, #tpu.memory_space<vmem>>, vector<8x32xf32>
    %1 = tpu.concatenate %0, %0 in 1 : vector<8x32xf32>, vector<8x32xf32> -> vector<8x64xf32>
    %c0_1 = arith.constant 0 : index
    %c0_2 = arith.constant 0 : index
    %2 = vector.load %arg1[%c0_1, %c0_2] : memref<8x64xf32, #tpu.memory_space<vmem>>, vector<8x64xf32>
    %3 = arith.addf %2, %1 : vector<8x64xf32>
    %c0_3 = arith.constant 0 : index
    %c0_4 = arith.constant 0 : index
    %4 = vector.load %arg3[%c0_3, %c0_4] : memref<8x64xf32, #tpu.memory_space<vmem>>, vector<8x64xf32>
    tpu.vector_store %arg3[%c0_3, %c0_4], %3 {strides = array<i32>} : memref<8x64xf32, #tpu.memory_space<vmem>>, vector<8x64xf32>,
    return
  }
  func.func @transform_0(%arg0: i32) -> (i32, i32) {
    %c0_i32 = arith.constant 0 : i32
    %c0_i32_0 = arith.constant 0 : i32
    return %arg0, %c0_i32 : i32, i32
  }
  func.func @transform_1(%arg0: i32) -> (i32, i32) {
    %c0_i32 = arith.constant 0 : i32
    %c0_i32_0 = arith.constant 0 : i32
    return %arg0, %c0_i32 : i32, i32
  }
  func.func @transform_2(%arg0: i32) -> (i32, i32) {
    %c0_i32 = arith.constant 0 : i32
    %c0_i32_0 = arith.constant 0 : i32
    return %arg0, %c0_i32 : i32, i32
  }
}

</mosaic_0001>

<bundles_post_ra>
// kernel: tpu_custom_call.1
= control target key start
LH: loop header
LB: loop body
LE: loop exit
PB: predicated region body
PF: predicated region fallthrough
CT: control target
= control target key end

     0   :  { %7 = vsyncpa [#allocation3], 0  ;;  %s179_s0 = inlined_call_operand.hbm [shape: f32[8,64], index: 0, kind: input, shape index: {}]   ;;  %s180_s1 = inlined_call_operand.hbm [shape: f32[8,32], index: 1, kind: input, shape index: {}]   ;;  %s181_s2 = inlined_call_operand.hbm [shape: f32[8,64], index: 2, kind: output, shape index: {}]  }
   0x1   :  { %8 = vsyncpa [#allocation6], 0 }
   0x2   :  { %9 = vsyncpa [#allocation4], 0  ;;  %s15_s11 = sshll.u32 %s179_s0, 4  ;;  %s151_s12 = smov [#allocation2]   ;;  %s16_s11 = int_to_ptr.hbm [resolvable:$true] %s15_s11 }
   0x3   :  { %s17_s13 = sshll.u32 %s151_s12, 4  ;;  %s26_s16 = sshll.u32 %s180_s1, 4  ;;  %s18_s13 = int_to_ptr.vmem [resolvable:$true] %s17_s13  ;;  %s27_s16 = int_to_ptr.hbm [resolvable:$true] %s26_s16 }
   0x4   :  { %20 = dma.hbm_to_vmem [thread:$0]  %s16_s11, 128, %s18_s13, [#allocation3]  }
   0x5   :  { %s152_s17 = smov [#allocation5]  }
   0x6   :  { %s28_s18 = sshll.u32 %s152_s17, 4  ;;  %s29_s18 = int_to_ptr.vmem [resolvable:$true] %s28_s18 }
   0x7   :  { %31 = dma.hbm_to_vmem [thread:$0]  %s27_s16, 128, %s29_s18, [#allocation6]  }
   0x8   :  { %145 = dma.done.wait [#allocation3], 128  }
   0x9   :  { %146 = vsyncadd [#allocation3], 4294967168 }
   0xa   :  { %147 = dma.done.wait [#allocation6], 128  }
   0xb   :  { %148 = vsyncadd [#allocation6], 4294967168  ;;  %v40_v0 = vld [vmem:[#allocation5] sm:$0xff]  ;;  %s153_s0 = smov 32   ;;  %vm45_vm0 = vcmask 261120   ;;  %v47_v1 = vld [vmem:[#allocation2] sm:$0xff] }
   0xc   :  { %42 = vrot.lane.b32.xlu0 %v40_v0, %s153_s0  ;;  %s154_s19 = smov [#allocation7]   ;;  %s58_s1 = sshll.u32 %s181_s2, 4  ;;  %vm49_vm1 = vcmask 523264   ;;  %s59_s1 = int_to_ptr.hbm [resolvable:$true] %s58_s1 }
   0xd   :  { %s56_s20 = sshll.u32 %s154_s19, 4  ;;  %s57_s20 = int_to_ptr.vmem [resolvable:$true] %s56_s20 }
  0x7e   :  { %v43_v2 = vpop.permute.xlu0 %42 }
  0x7f   :  { %v46_v3 = vsel %vm45_vm0, %v40_v0, %v43_v2 }
  0x80   :  { %v48_v4 = vadd.f32 %v47_v1, %v46_v3 }
  0x82   :  { %50 = vst.msk [vmem:[#allocation7] sm:$0xff] %vm49_vm1, %v48_v4 }
  0x83   :  { %61 = dma.vmem_to_hbm [thread:$0]  %s57_s20, 128, %s59_s1, [#allocation4]  }
  0x84   :  { %149 = dma.done.wait [#allocation4], 128  }
  0x85   :  { %150 = vsyncadd [#allocation4], 4294967168 }
  0x86   :  { %66 = vsyncpa [#allocation3], 1 }
  0x87   :  { %67 = vsyncpa [#allocation6], 1 }
  0x88   :  { %68 = vsyncpa [#allocation4], 1 }

</bundles_post_ra>
